<compile_context>
chip_gen: v6e
topology: v6e:2x2x1
jax: 0.10.0
libtpu: 0.0.40
codegen_flags: <defaults>
</compile_context>

<pallas_src>
import math

import jax
import jax.numpy as jnp
from jax.experimental import pallas as pl
from jax.experimental.pallas import tpu as pltpu


def edge_attention_kernel(e1_ref, e2_ref,
                          wqv1_ref, bqv1_ref,
                          wkv2_ref, bkv2_ref,
                          wo_ref, bo_ref,
                          out_ref):
    """One (batch, l-tile) step.

    e1_ref block: (1, TL, N, D)  rows ef[b, i, l, :]  -> layout (l, i, d)
    e2_ref block: (1, TL, N, D)  rows ef[b, l, j, :]  -> layout (l, j, d)
    out_ref block: (1, TL, N, D) in (l, i, d) layout (wrapper transposes back).
    """
    f32 = jnp.float32
    x1 = e1_ref[0]                       # (TL, N, D) f32
    x2 = e2_ref[0]                       # (TL, N, D) f32
    tl, n, d = x1.shape
    mdt = wqv1_ref.dtype                 # matmul dtype (bf16 on the MXU path)

    # ---- fused input projections: one wide matmul per view ------------------
    x1f = x1.reshape(tl * n, d).astype(mdt)
    x2f = x2.reshape(tl * n, d).astype(mdt)
    # [q | v1] = x1 @ [Wq^T/sqrt(D) | Wv1^T] ;  [k | v2] = x2 @ [Wk^T | Wv2^T]
    qv1 = jnp.dot(x1f, wqv1_ref[...], preferred_element_type=f32) + bqv1_ref[...]
    kv2 = jnp.dot(x2f, wkv2_ref[...], preferred_element_type=f32) + bkv2_ref[...]

    q  = qv1[:, :d].reshape(tl, n, d)    # 1/sqrt(D) already folded into Wq, bq
    v1 = qv1[:, d:].reshape(tl, n, d)
    k  = kv2[:, :d].reshape(tl, n, d)
    v2 = kv2[:, d:].reshape(tl, n, d)

    # ---- per-l attention over j (batched over the TL axis) ------------------
    # s[l, i, j] = q[l, i, :] . k[l, j, :]   (contract last dims, no k.T)
    s = jnp.einsum('lqd,lkd->lqk', q.astype(mdt), k.astype(mdt),
                   preferred_element_type=f32)
    s = s - jnp.max(s, axis=-1, keepdims=True)
    p = jnp.exp(s)
    a = p * pl.reciprocal(jnp.sum(p, axis=-1, keepdims=True), approx=True)

    # out[l, i, :] = v1[l, i, :] * sum_j a[l, i, j] * v2[l, j, :]
    ctx = v1 * jnp.einsum('lqk,lkd->lqd', a.astype(mdt), v2.astype(mdt),
                          preferred_element_type=f32)

    # ---- output projection + residual ---------------------------------------
    o = jnp.dot(ctx.reshape(tl * n, d).astype(mdt), wo_ref[...],
                preferred_element_type=f32) + bo_ref[...]
    out_ref[0] = (o.reshape(tl, n, d) + x1).astype(out_ref.dtype)


def _pick_l_tile(n, d, itemsize=4, vmem_budget_bytes=24 * 1024 * 1024):
    """Largest TL dividing N whose working set fits a v7x-safe VMEM budget
    (64 MiB physical / 32 MiB default-scoped on v7x; budget leaves headroom)."""
    # per l-slice: 3 slabs x double buffer x N*D*itemsize  +  ~10 f32 temps
    per_l = n * d * (6 * itemsize + 10 * 4) + 3 * n * n * 4
    tl = max(1, min(n, vmem_budget_bytes // max(per_l, 1)))
    while n % tl:
        tl -= 1
    return tl


def edge_attention_module(ef, params, *, l_tile=None, use_bf16=True):
    """Forward of EdgeAttentionModule (EdgeAttention + residual).

    ef: (B, N, N, D) float32.  Returns (B, N, N, D).
    """
    B, N, N2, D = ef.shape
    assert N == N2, "edge tensor must be (B, N, N, D)"
    assert N % 8 == 0, "N must be a multiple of 8 (TPU sublane tiling)"

    tl = l_tile if l_tile is not None else _pick_l_tile(N, D)
    assert N % tl == 0

    mdt = jnp.bfloat16 if use_bf16 else ef.dtype
    scale = 1.0 / math.sqrt(D)

    # Pre-transpose + stack weights (PyTorch Linear stores W as (out, in)):
    #   x1 @ [Wq^T*scale | Wv1^T],   x2 @ [Wk^T | Wv2^T],   ctx @ Wo^T
    wqv1 = jnp.concatenate([params["Wq"].T * scale, params["Wv1"].T], axis=1).astype(mdt)
    wkv2 = jnp.concatenate([params["Wk"].T, params["Wv2"].T], axis=1).astype(mdt)
    wo_t = params["Wo"].T.astype(mdt)
    bqv1 = jnp.concatenate([params["bq"] * scale, params["bv1"]]).reshape(1, 2 * D)
    bkv2 = jnp.concatenate([params["bk"], params["bv2"]]).reshape(1, 2 * D)
    bo = params["bo"].reshape(1, D)

    # Two views of ef.  The i<->l swap for the q/v1 path is done once in XLA
    # (in-kernel alternatives need lowering features not guaranteed on Mosaic).
    e1 = jnp.transpose(ef, (0, 2, 1, 3))   # (B, l, i, D)
    e2 = ef                                # (B, l, j, D)

    slab = lambda: pl.BlockSpec((1, tl, N, D), lambda b, lt: (b, lt, 0, 0))
    full = lambda shape: pl.BlockSpec(shape, lambda b, lt: (0,) * len(shape))

    grid_spec = pltpu.PrefetchScalarGridSpec(
        num_scalar_prefetch=0,
        grid=(B, N // tl),
        in_specs=[
            slab(), slab(),
            full((D, 2 * D)), full((1, 2 * D)),
            full((D, 2 * D)), full((1, 2 * D)),
            full((D, D)), full((1, D)),
        ],
        out_specs=slab(),
    )

    out_lid = pl.pallas_call(
        edge_attention_kernel,
        out_shape=jax.ShapeDtypeStruct((B, N, N, D), ef.dtype),  # (b, l, i, d)
        grid_spec=grid_spec,
        compiler_params=pltpu.CompilerParams(
            dimension_semantics=("parallel", "parallel"),
            vmem_limit_bytes=32 * 1024 * 1024,
        ),
    )(e1, e2, wqv1, bqv1, wkv2, bkv2, wo_t, bo)

    return jnp.transpose(out_lid, (0, 2, 1, 3))   # back to (b, i, l, d)


def reference(ef, params):
    """Pure-JAX reference mirroring the PyTorch forward exactly."""
    D = ef.shape[-1]
    lin = lambda x, w, b: jnp.einsum("...d,ed->...e", x, w) + b
    q = lin(ef, params["Wq"], params["bq"])
    k = lin(ef, params["Wk"], params["bk"])
    v1 = lin(ef, params["Wv1"], params["bv1"])
    v2 = lin(ef, params["Wv2"], params["bv2"])
    v_il = v1[:, :, :, None, :]            # b i l 1 d
    v_li = v2[:, None, :, :, :]            # b 1 l j d
    v_ilj = v_il * v_li
    q_il = q[:, :, :, None, :]
    k_lj = k[:, None, :, :, :]
    qk = (q_il * k_lj).sum(-1, keepdims=True) / math.sqrt(D)   # b i l j 1
    a = jax.nn.softmax(qk, axis=-2)
    out = lin((v_ilj * a).sum(-2), params["Wo"], params["bo"])
    return out + ef   # residual=True


def init_params(key, D):
    bound = 1.0 / math.sqrt(D)
    params = {}
    for name in ("q", "k", "v1", "v2", "o"):
        key, kw, kb = jax.random.split(key, 3)
        params[f"W{name}"] = jax.random.uniform(kw, (D, D), jnp.float32, -bound, bound)
        params[f"b{name}"] = jax.random.uniform(kb, (D,), jnp.float32, -bound, bound)
    return params


if __name__ == "__main__":
    B, N, D = 2, 8, 32
    key = jax.random.PRNGKey(0)
    key, kx = jax.random.split(key)
    ef = jax.random.normal(kx, (B, N, N, D), jnp.float32)
    params = init_params(key, D)

    ref = reference(ef, params)

    # f32 MXU path: tight check against the pure-JAX reference.
    out_f32 = jax.block_until_ready(edge_attention_module(ef, params, use_bf16=False))
    assert out_f32.shape == (B, N, N, D)
    assert jnp.allclose(out_f32, ref, rtol=1e-3, atol=1e-3), \
        f"f32 max err {jnp.max(jnp.abs(out_f32 - ref))}"

    # bf16 MXU path (production config per the perf review), f32 softmax/residual.
    out_bf16 = jax.block_until_ready(edge_attention_module(ef, params, use_bf16=True))
    assert out_bf16.shape == (B, N, N, D)
    assert jnp.allclose(out_bf16, ref, rtol=2e-2, atol=2e-2), \
        f"bf16 max err {jnp.max(jnp.abs(out_bf16 - ref))}"

    print("KERNEL_OK")
</pallas_src>

<mosaic_0001>
module attributes {stable_mosaic.version = 11 : i64} {
  func.func @edge_attention_kernel(%arg0: i32, %arg1: i32, %arg2: memref<1x8x8x32xf32, #tpu.memory_space<vmem>>, %arg3: memref<1x8x8x32xf32, #tpu.memory_space<vmem>>, %arg4: memref<32x64xf32, #tpu.memory_space<vmem>>, %arg5: memref<1x64xf32, #tpu.memory_space<vmem>>, %arg6: memref<32x64xf32, #tpu.memory_space<vmem>>, %arg7: memref<1x64xf32, #tpu.memory_space<vmem>>, %arg8: memref<32x32xf32, #tpu.memory_space<vmem>>, %arg9: memref<1x32xf32, #tpu.memory_space<vmem>>, %arg10: memref<1x8x8x32xf32, #tpu.memory_space<vmem>>) attributes {dimension_semantics = [#tpu.dimension_semantics<parallel>, #tpu.dimension_semantics<parallel>], iteration_bounds = array<i64: 2, 1>, scalar_prefetch = 0 : i64, scratch_operands = 0 : i64, tpu.core_type = #tpu.core_type<tc>, window_params = [{transform_indices = @transform_0, window_bounds = array<i64: 1, 8, 8, 32>}, {transform_indices = @transform_1, window_bounds = array<i64: 1, 8, 8, 32>}, {pipeline_mode = #tpu.pipeline_mode<synchronous>, transform_indices = @transform_2, window_bounds = array<i64: 32, 64>}, {pipeline_mode = #tpu.pipeline_mode<synchronous>, transform_indices = @transform_3, window_bounds = array<i64: 1, 64>}, {pipeline_mode = #tpu.pipeline_mode<synchronous>, transform_indices = @transform_4, window_bounds = array<i64: 32, 64>}, {pipeline_mode = #tpu.pipeline_mode<synchronous>, transform_indices = @transform_5, window_bounds = array<i64: 1, 64>}, {pipeline_mode = #tpu.pipeline_mode<synchronous>, transform_indices = @transform_6, window_bounds = array<i64: 32, 32>}, {pipeline_mode = #tpu.pipeline_mode<synchronous>, transform_indices = @transform_7, window_bounds = array<i64: 1, 32>}, {transform_indices = @transform_8, window_bounds = array<i64: 1, 8, 8, 32>}]} {
    %c0 = arith.constant 0 : index
    %c0_0 = arith.constant 0 : index
    %c0_1 = arith.constant 0 : index
    %c0_2 = arith.constant 0 : index
    %0 = vector.load %arg2[%c0, %c0_0, %c0_1, %c0_2] : memref<1x8x8x32xf32, #tpu.memory_space<vmem>>, vector<1x8x8x32xf32>
    %1 = vector.shape_cast %0 : vector<1x8x8x32xf32> to vector<8x8x32xf32>
    %c0_3 = arith.constant 0 : index
    %c0_4 = arith.constant 0 : index
    %c0_5 = arith.constant 0 : index
    %c0_6 = arith.constant 0 : index
    %2 = vector.load %arg3[%c0_3, %c0_4, %c0_5, %c0_6] : memref<1x8x8x32xf32, #tpu.memory_space<vmem>>, vector<1x8x8x32xf32>
    %3 = vector.shape_cast %2 : vector<1x8x8x32xf32> to vector<8x8x32xf32>
    %4 = vector.shape_cast %1 : vector<8x8x32xf32> to vector<64x32xf32>
    %5 = vector.shape_cast %3 : vector<8x8x32xf32> to vector<64x32xf32>
    %c0_7 = arith.constant 0 : index
    %c0_8 = arith.constant 0 : index
    %6 = vector.load %arg4[%c0_7, %c0_8] : memref<32x64xf32, #tpu.memory_space<vmem>>, vector<32x64xf32>
    %cst = arith.constant dense<0.000000e+00> : vector<64x64xf32>
    %7 = tpu.matmul %4, %6, %cst {dimension_numbers = #tpu.dot_dimension_numbers<[1], [0], [0], [1], [0, 0, 1, 1], [], []>} : vector<64x32xf32>, vector<32x64xf32>, vector<64x64xf32> -> vector<64x64xf32>
    %c0_9 = arith.constant 0 : index
    %c0_10 = arith.constant 0 : index
    %8 = vector.load %arg5[%c0_9, %c0_10] : memref<1x64xf32, #tpu.memory_space<vmem>>, vector<1x64xf32>
    %9 = vector.broadcast %8 : vector<1x64xf32> to vector<64x64xf32>
    %10 = arith.addf %7, %9 : vector<64x64xf32>
    %c0_11 = arith.constant 0 : index
    %c0_12 = arith.constant 0 : index
    %11 = vector.load %arg6[%c0_11, %c0_12] : memref<32x64xf32, #tpu.memory_space<vmem>>, vector<32x64xf32>
    %cst_13 = arith.constant dense<0.000000e+00> : vector<64x64xf32>
    %12 = tpu.matmul %5, %11, %cst_13 {dimension_numbers = #tpu.dot_dimension_numbers<[1], [0], [0], [1], [0, 0, 1, 1], [], []>} : vector<64x32xf32>, vector<32x64xf32>, vector<64x64xf32> -> vector<64x64xf32>
    %c0_14 = arith.constant 0 : index
    %c0_15 = arith.constant 0 : index
    %13 = vector.load %arg7[%c0_14, %c0_15] : memref<1x64xf32, #tpu.memory_space<vmem>>, vector<1x64xf32>
    %14 = vector.broadcast %13 : vector<1x64xf32> to vector<64x64xf32>
    %15 = arith.addf %12, %14 : vector<64x64xf32>
    %16 = vector.extract_strided_slice %10 {offsets = [0, 0], sizes = [64, 32], strides = [1, 1]} : vector<64x64xf32> to vector<64x32xf32>
    %17 = vector.shape_cast %16 : vector<64x32xf32> to vector<8x8x32xf32>
    %18 = vector.extract_strided_slice %10 {offsets = [0, 32], sizes = [64, 32], strides = [1, 1]} : vector<64x64xf32> to vector<64x32xf32>
    %19 = vector.shape_cast %18 : vector<64x32xf32> to vector<8x8x32xf32>
    %20 = vector.extract_strided_slice %15 {offsets = [0, 0], sizes = [64, 32], strides = [1, 1]} : vector<64x64xf32> to vector<64x32xf32>
    %21 = vector.shape_cast %20 : vector<64x32xf32> to vector<8x8x32xf32>
    %22 = vector.extract_strided_slice %15 {offsets = [0, 32], sizes = [64, 32], strides = [1, 1]} : vector<64x64xf32> to vector<64x32xf32>
    %23 = vector.shape_cast %22 : vector<64x32xf32> to vector<8x8x32xf32>
    "tpu.trace_start"() <{level = 10 : i32, message = "lqd,lkd->lqk"}> : () -> ()
    %cst_16 = arith.constant dense<0.000000e+00> : vector<8x8x8xf32>
    %24 = tpu.matmul %17, %21, %cst_16 {dimension_numbers = #tpu.dot_dimension_numbers<[2], [2], [1], [1], [0, 0, 0, 1, 1, 1], [0], [0]>} : vector<8x8x32xf32>, vector<8x8x32xf32>, vector<8x8x8xf32> -> vector<8x8x8xf32>
    "tpu.trace_stop"() : () -> ()
    %cst_17 = arith.constant dense<0xFF800000> : vector<8x8xf32>
    %25 = vector.multi_reduction <maximumf>, %24, %cst_17 [2] : vector<8x8x8xf32> to vector<8x8xf32>
    %26 = vector.shape_cast %25 : vector<8x8xf32> to vector<8x8x1xf32>
    %27 = vector.broadcast %26 : vector<8x8x1xf32> to vector<8x8x8xf32>
    %28 = arith.subf %24, %27 : vector<8x8x8xf32>
    %29 = math.exp %28 : vector<8x8x8xf32>
    %cst_18 = arith.constant dense<0.000000e+00> : vector<8x8xf32>
    %30 = vector.multi_reduction <add>, %29, %cst_18 [2] : vector<8x8x8xf32> to vector<8x8xf32>
    %31 = vector.shape_cast %30 : vector<8x8xf32> to vector<8x8x1xf32>
    %32 = tpu.reciprocal %31 {approx = true} : vector<8x8x1xf32> -> vector<8x8x1xf32>
    %33 = vector.broadcast %32 : vector<8x8x1xf32> to vector<8x8x8xf32>
    %34 = arith.mulf %29, %33 : vector<8x8x8xf32>
    "tpu.trace_start"() <{level = 10 : i32, message = "lqk,lkd->lqd"}> : () -> ()
    %cst_19 = arith.constant dense<0.000000e+00> : vector<8x8x32xf32>
    %35 = tpu.matmul %34, %23, %cst_19 {dimension_numbers = #tpu.dot_dimension_numbers<[2], [1], [1], [2], [0, 0, 0, 1, 1, 2], [0], [0]>} : vector<8x8x8xf32>, vector<8x8x32xf32>, vector<8x8x32xf32> -> vector<8x8x32xf32>
    "tpu.trace_stop"() : () -> ()
    %36 = arith.mulf %19, %35 : vector<8x8x32xf32>
    %37 = vector.shape_cast %36 : vector<8x8x32xf32> to vector<64x32xf32>
    %c0_20 = arith.constant 0 : index
    %c0_21 = arith.constant 0 : index
    %38 = vector.load %arg8[%c0_20, %c0_21] : memref<32x32xf32, #tpu.memory_space<vmem>>, vector<32x32xf32>
    %cst_22 = arith.constant dense<0.000000e+00> : vector<64x32xf32>
    %39 = tpu.matmul %37, %38, %cst_22 {dimension_numbers = #tpu.dot_dimension_numbers<[1], [0], [0], [1], [0, 0, 1, 1], [], []>} : vector<64x32xf32>, vector<32x32xf32>, vector<64x32xf32> -> vector<64x32xf32>
    %c0_23 = arith.constant 0 : index
    %c0_24 = arith.constant 0 : index
    %40 = vector.load %arg9[%c0_23, %c0_24] : memref<1x32xf32, #tpu.memory_space<vmem>>, vector<1x32xf32>
    %41 = vector.broadcast %40 : vector<1x32xf32> to vector<64x32xf32>
    %42 = arith.addf %39, %41 : vector<64x32xf32>
    %43 = vector.shape_cast %42 : vector<64x32xf32> to vector<8x8x32xf32>
    %44 = arith.addf %43, %1 : vector<8x8x32xf32>
    %c0_25 = arith.constant 0 : index
    %c0_26 = arith.constant 0 : index
    %c0_27 = arith.constant 0 : index
    %c0_28 = arith.constant 0 : index
    %45 = vector.load %arg10[%c0_25, %c0_26, %c0_27, %c0_28] : memref<1x8x8x32xf32, #tpu.memory_space<vmem>>, vector<1x8x8x32xf32>
    %46 = vector.shape_cast %45 : vector<1x8x8x32xf32> to vector<8x8x32xf32>
    %47 = vector.shape_cast %44 : vector<8x8x32xf32> to vector<1x8x8x32xf32>
    tpu.vector_store %arg10[%c0_25, %c0_26, %c0_27, %c0_28], %47 {strides = array<i32>} : memref<1x8x8x32xf32, #tpu.memory_space<vmem>>, vector<1x8x8x32xf32>,
    return
  }
  func.func @transform_0(%arg0: i32, %arg1: i32) -> (i32, i32, i32, i32) {
    %c0_i32 = arith.constant 0 : i32
    %c0_i32_0 = arith.constant 0 : i32
    %c0_i32_1 = arith.constant 0 : i32
    return %arg0, %arg1, %c0_i32, %c0_i32_0 : i32, i32, i32, i32
  }
  func.func @transform_1(%arg0: i32, %arg1: i32) -> (i32, i32, i32, i32) {
    %c0_i32 = arith.constant 0 : i32
    %c0_i32_0 = arith.constant 0 : i32
    %c0_i32_1 = arith.constant 0 : i32
    return %arg0, %arg1, %c0_i32, %c0_i32_0 : i32, i32, i32, i32
  }
  func.func @transform_2(%arg0: i32, %arg1: i32) -> (i32, i32) {
    %c0_i32 = arith.constant 0 : i32
    %c0_i32_0 = arith.constant 0 : i32
    %c0_i32_1 = arith.constant 0 : i32
    return %c0_i32, %c0_i32_0 : i32, i32
  }
  func.func @transform_3(%arg0: i32, %arg1: i32) -> (i32, i32) {
    %c0_i32 = arith.constant 0 : i32
    %c0_i32_0 = arith.constant 0 : i32
    %c0_i32_1 = arith.constant 0 : i32
    return %c0_i32, %c0_i32_0 : i32, i32
  }
  func.func @transform_4(%arg0: i32, %arg1: i32) -> (i32, i32) {
    %c0_i32 = arith.constant 0 : i32
    %c0_i32_0 = arith.constant 0 : i32
    %c0_i32_1 = arith.constant 0 : i32
    return %c0_i32, %c0_i32_0 : i32, i32
  }
  func.func @transform_5(%arg0: i32, %arg1: i32) -> (i32, i32) {
    %c0_i32 = arith.constant 0 : i32
    %c0_i32_0 = arith.constant 0 : i32
    %c0_i32_1 = arith.constant 0 : i32
    return %c0_i32, %c0_i32_0 : i32, i32
  }
  func.func @transform_6(%arg0: i32, %arg1: i32) -> (i32, i32) {
    %c0_i32 = arith.constant 0 : i32
    %c0_i32_0 = arith.constant 0 : i32
    %c0_i32_1 = arith.constant 0 : i32
    return %c0_i32, %c0_i32_0 : i32, i32
  }
  func.func @transform_7(%arg0: i32, %arg1: i32) -> (i32, i32) {
    %c0_i32 = arith.constant 0 : i32
    %c0_i32_0 = arith.constant 0 : i32
    %c0_i32_1 = arith.constant 0 : i32
    return %c0_i32, %c0_i32_0 : i32, i32
  }
  func.func @transform_8(%arg0: i32, %arg1: i32) -> (i32, i32, i32, i32) {
    %c0_i32 = arith.constant 0 : i32
    %c0_i32_0 = arith.constant 0 : i32
    %c0_i32_1 = arith.constant 0 : i32
    return %arg0, %arg1, %c0_i32, %c0_i32_0 : i32, i32, i32, i32
  }
}

</mosaic_0001>

<bundles_post_ra>
// kernel: tpu_custom_call.1
= control target key start
LH: loop header
LB: loop body
LE: loop exit
PB: predicated region body
PF: predicated region fallthrough
CT: control target
= control target key end

     0   :  { %s3628_s0 = inlined_call_operand.hbm [shape: f32[2,8,8,32], index: 0, kind: input, shape index: {}]   ;;  %s3629_s1 = inlined_call_operand.hbm [shape: f32[2,8,8,32], index: 1, kind: input, shape index: {}]   ;;  %s3630_s2 = inlined_call_operand.hbm [shape: f32[32,64], index: 2, kind: input, shape index: {}]   ;;  %s3631_s3 = inlined_call_operand.vmem [shape: f32[1,64], index: 3, kind: input, shape index: {}]   ;;  %s3632_s4 = inlined_call_operand.hbm [shape: f32[32,64], index: 4, kind: input, shape index: {}]   ;;  %s3633_s5 = inlined_call_operand.vmem [shape: f32[1,64], index: 5, kind: input, shape index: {}]   ;;  %s3634_s6 = inlined_call_operand.hbm [shape: f32[32,32], index: 6, kind: input, shape index: {}]   ;;  %s3635_s7 = inlined_call_operand.vmem [shape: f32[1,32], index: 7, kind: input, shape index: {}]   ;;  %s3636_s8 = inlined_call_operand.hbm [shape: f32[2,8,8,32], index: 8, kind: output, shape index: {}]  }
   0x1   :  { %3645 = sst [smem:[#allocation20_spill]] %s3628_s0 }
   0x2   :  { %3646 = sst [smem:[#allocation21_spill]] %s3630_s2 }
   0x3   :  { %3647 = sst [smem:[#allocation22_spill]] %s3632_s4 }
   0x4   :  { %3648 = sst [smem:[#allocation23_spill]] %s3634_s6 }
   0x5   :  { %13 = vsyncpa [#allocation3], 0 }
   0x6   :  { %15 = vsyncpa [#allocation3 + $0x1], 0 }
   0x7   :  { %16 = vsyncpa [#allocation6], 0 }
   0x8   :  { %18 = vsyncpa [#allocation6 + $0x1], 0 }
   0x9   :  { %19 = vsyncpa [#allocation9], 0 }
   0xa   :  { %20 = vsyncpa [#allocation4], 0 }
   0xb   :  { %22 = vsyncpa [#allocation4 + $0x1], 0  ;;  %s3123_s27 = smov 0   ;;  %s3125_s28 = smov 0  }
   0xc   :  { %s3127_s29 = smov 0   ;;  %s3129_s30 = smov 0  }
   0xd   :  { %s3131_s9 = smov 0   ;;  %s3133_s10 = smov 0  }
   0xe LB: > { %3649 = sst [smem:[#allocation17_spill]] %s3058_s9  ;;  %s3154_s11 = sadd.s32 4294967295, %s3062_s10   ;;  %s3062_s10 = sphi %s3133_s10, %s28_s10   ;;  %s3058_s9 = sphi %s3131_s9, %s3671_s9   ;;  %s3054_s30 = sphi %s3129_s30, %s3670_s30   ;;  %s3050_s29 = sphi %s3127_s29, %s3674_s29   ;;  %s3046_s28 = sphi %s3125_s28, %s3673_s28   ;;  %s3042_s27 = sphi %s3123_s27, %s3672_s27  }
   0xf   : > { %s2404_s12 = sadd.s32 4294967294, %s3062_s10   ;;  %p62_p0 = scmp.ne.s32.totalorder %s3046_s28, %s3042_s27 }
  0x10   : > { %p3637_p1 = scmp.eq.s32.totalorder %s3154_s11, 0  ;;  %p242_p2 = scmp.eq.s32.totalorder %s3154_s11, 1 }
  0x11   : > { %p248_p3 = scmp.eq.s32.totalorder %s2404_s12, 1  ;;  %p2405_p5 = scmp.ge.s32.totalorder %s3062_s10, 1 }
  0x12   : > { %p3163_p4 = por %p3637_p1, %p62_p0  ;;  %p255_p7 = scmp.lt.s32.totalorder %s3062_s10, 3 }
  0x13   : > { %p3168_p6 = por %p248_p3, %p62_p0  ;;  %s3064_s16 = smov [#allocation7]  }
  0x14   : > { %p3173_p8 = pnand %p2405_p5, %p255_p7  ;;  %s267_s17 = sshll.u32 %s3064_s16, 4  ;;  %s268_s17 = int_to_ptr.vmem [resolvable:$true] %s267_s17 }
  0x15   : > { %s3651_s14 = scalar_select %p3168_p6, 1, 0 }
  0x16   : > { %p2716_p9 = pneg %p3173_p8  ;;  %s3065_s19 = smov [#allocation8]  }
  0x17   : > { %3652 = sst [smem:[#allocation18_spill]] %s3651_s14  ;;  %s283_s20 = sshll.u32 %s3065_s19, 4  ;;  %s284_s20 = int_to_ptr.vmem [resolvable:$true] %s283_s20 }
  0x18   : > { %p3182_p11 = pnand %p2716_p9, %p3637_p1  ;;  %s3066_s21 = smov [#allocation10]  }
  0x19   : > { %s299_s22 = sshll.u32 %s3066_s21, 4  ;;  %s2847_s23 = scalar_lea.vmem %s268_s17, 512  ;;  %s300_s22 = int_to_ptr.vmem [resolvable:$true] %s299_s22 }
  0x1a   : > { %p2838_p12 = pneg %p3182_p11  ;;  %p2848_p13 = scmp.ne.s32.totalorder %s268_s17, %s2847_s23 }
  0x1b   : > { %p2855_p5 = scmp.lt.s32.totalorder %s268_s17, %s268_s17  ;;  %p2856_p7 = scmp.lt.s32.totalorder %s2847_s23, %s2847_s23 }
  0x1c   : > { %p2850_p0 = pnand %p2848_p13, %p2838_p12 }
  0x1d   : > { %p2857_p9 = por %p2856_p7, %p2855_p5 }
  0x1e   : > { %p2851_p3 = pneg %p2850_p0 }
  0x20   : > { %p2858_p10 = pnand %p2857_p9, %p2851_p3 }
  0x22   : > { %2861 = shalt.err (!%p2858_p10)
}
  0x23   : > { %s3638_s24 = smov 128   ;;  %s3640_s25 = smov 8  }
  0x24   : > { %s3655_s2 = sld [smem:[#allocation21_spill]]  ;;  %s2873_s16 = scalar_lea.vmem %s284_s20, 512 }
  0x25   : > { %p2874_p13 = scmp.ne.s32.totalorder %s284_s20, %s2873_s16  ;;  %p2881_p3 = scmp.lt.s32.totalorder %s284_s20, %s284_s20 }
  0x26   : > { %p2882_p10 = scmp.lt.s32.totalorder %s2873_s16, %s2873_s16 }
  0x27   : > { %p2876_p0 = pnand %p2874_p13, %p2838_p12 }
  0x28   : > { %p2883_p7 = por %p2882_p10, %p2881_p3 }
  0x29   : > { %p2877_p5 = pneg %p2876_p0 }
  0x2a   : > { %2719 = dma.hbm_to_vmem [thread:$0]  (!%p3182_p11), %s3655_s2, 512, %s268_s17, [#allocation6], %s3638_s24, %s3638_s24, %s3640_s25  }
  0x2b   : > { %p2884_p9 = pnand %p2883_p7, %p2877_p5 }
  0x2d   : > { %2887 = shalt.err (!%p2884_p9)
}
  0x2e   : > { %s3656_s4 = sld [smem:[#allocation22_spill]]  ;;  %s2899_s17 = scalar_lea.vmem %s300_s22, 512 }
  0x2f   : > { %p2900_p1 = scmp.ne.s32.totalorder %s300_s22, %s2899_s17  ;;  %p2907_p3 = scmp.lt.s32.totalorder %s300_s22, %s300_s22 }
  0x30   : > { %p2908_p5 = scmp.lt.s32.totalorder %s2899_s17, %s2899_s17 }
  0x31   : > { %p2902_p13 = pnand %p2900_p1, %p2838_p12 }
  0x32   : > { %p2909_p10 = por %p2908_p5, %p2907_p3 }
  0x33   : > { %p2903_p0 = pneg %p2902_p13 }
  0x34   : > { %2722 = dma.hbm_to_vmem [thread:$0]  (!%p3182_p11), %s3656_s4, 512, %s284_s20, [#allocation9], %s3638_s24, %s3638_s24, %s3640_s25  }
  0x35   : > { %p2910_p7 = pnand %p2909_p10, %p2903_p0 }
  0x37   : > { %2913 = shalt.err (!%p2910_p7)
}
  0x38   : > { %s3657_s6 = sld [smem:[#allocation23_spill]]  ;;  %s49_s20 = sadd.s32 1, %s3050_s29 }
  0x39   : > { %s40_s18 = sadd.s32 1, %s3058_s9  ;;  %p56_p1 = scmp.ne.s32.totalorder %s3050_s29, %s3046_s28 }
  0x3a   : > { %p42_p12 = scmp.ge.s32.totalorder %s40_s18, 2  ;;  %p57_p9 = scmp.eq.s32.totalorder %s3062_s10, 0 }
  0x3b   : > { %p3228_p13 = por %p242_p2, %p56_p1  ;;  %p2740_p0 = scmp.lt.s32.totalorder %s3062_s10, 2 }
  0x3c   : > { %s3676_s18 = smov (%p42_p12, %s40_s18), 0  ;;  %p58_p3 = por %p57_p9, %p56_p1 }
  0x3d   : > { %3659 = sst [smem:[#allocation19_spill]] %s3676_s18  ;;  %s316_s16 = sand.u32 1, %s3050_s29  }
  0x3e   : > { %2725 = dma.hbm_to_vmem [thread:$0]  (!%p3182_p11), %s3657_s6, 512, %s300_s22, [#allocation9], %s3638_s24, %s3638_s24, %s3640_s25  }
  0x3f   : > { %s44_s19 = ssub.s32 %s3058_s9, %s3676_s18  ;;  %s2410_s22 = sshll.u32 %s316_s16, 6 }
  0x40   : > { %p47_p5 = scmp.eq.s32.totalorder %s44_s19, 0  ;;  %s2479_s21 = sshll.u32 %s3058_s9, 10 }
  0x41   : > { %s3660_s0 = sld [smem:[#allocation20_spill]]  ;;  %s320_s25 = scalar_lea.vmem [#allocation2], %s2410_s22 }
  0x42   : > { %s3240_s17 = scalar_select %p47_p5, %s3050_s29, %s49_s20  }
  0x43   : > { %s329_s2 = sshll.u32 %s320_s25, 4  ;;  %p3247_p2 = pnand %p2740_p0, %p58_p3  ;;  %s330_s2 = int_to_ptr.vmem [resolvable:$true] %s329_s2 }
  0x44   : > { %s3254_s19 = scalar_lea.hbm %s3629_s1, %s2479_s21  ;;  %s343_s20 = scalar_lea.vmem [#allocation5], %s2410_s22 }
  0x45   : > { %s352_s18 = sshll.u32 %s343_s20, 4  ;;  %s317_s9 = scalar_lea.sflag [#allocation3], %s316_s16  ;;  %s353_s18 = int_to_ptr.vmem [resolvable:$true] %s352_s18 }
  0x46   : > { %p2916_p11 = pneg %p3247_p2  ;;  %s2927_s23 = scalar_lea.vmem %s330_s2, 1024 }
  0x47   : > { %s328_s24 = scalar_lea.hbm %s3660_s0, %s2479_s21  ;;  %p2928_p10 = scmp.ne.s32.totalorder %s330_s2, %s2927_s23 }
  0x48   : > { %s3069_s25 = smov [#allocation2]  }
  0x49   : > { %p2930_p7 = pnand %p2928_p10, %p2916_p11  ;;  %s2932_s26 = sshll.u32 %s3069_s25, 4  ;;  %s2933_s26 = int_to_ptr.vmem [resolvable:$false] %s2932_s26 }
  0x4a   : > { %s2934_s0 = scalar_lea.vmem %s2933_s26, 2048  ;;  %p2935_p12 = scmp.lt.s32.totalorder %s330_s2, %s2933_s26 }
  0x4b   : > { %p2931_p1 = pneg %p2930_p7  ;;  %p2936_p9 = scmp.lt.s32.totalorder %s2934_s0, %s2927_s23 }
  0x4d   : > { %p2937_p0 = por %p2936_p9, %p2935_p12 }
  0x4f   : > { %p2938_p3 = pnand %p2937_p0, %p2931_p1 }
  0x51   : > { %2941 = shalt.err (!%p2938_p3)
}
  0x52   : > { %s3662_s6 = smov 8   ;;  %s3663_s14 = smov 128  }
  0x53   : > { %2729 = dma.hbm_to_vmem [thread:$0]  (!%p3247_p2), %s328_s24, 1024, %s330_s2, %s317_s9, %s3663_s14, %s3663_s14, %s3662_s6  }
  0x54   : > { %s339_s16 = sand.u32 1, %s3062_s10   ;;  %s2955_s21 = scalar_lea.vmem %s353_s18, 1024 }
  0x55   : > { %s340_s22 = scalar_lea.sflag [#allocation6], %s339_s16  ;;  %p2956_p5 = scmp.ne.s32.totalorder %s353_s18, %s2955_s21 }
  0x56   : > { %s3070_s0 = smov [#allocation5]  }
  0x57   : > { %p2958_p10 = pnand %p2956_p5, %p2916_p11  ;;  %s2960_s20 = sshll.u32 %s3070_s0, 4  ;;  %s2961_s20 = int_to_ptr.vmem [resolvable:$false] %s2960_s20 }
  0x58   : > { %s2962_s23 = scalar_lea.vmem %s2961_s20, 2048  ;;  %p2963_p1 = scmp.lt.s32.totalorder %s353_s18, %s2961_s20 }
  0x59   : > { %p2959_p7 = pneg %p2958_p10  ;;  %p2964_p12 = scmp.lt.s32.totalorder %s2962_s23, %s2955_s21 }
  0x5b   : > { %p2965_p9 = por %p2964_p12, %p2963_p1 }
  0x5d   : > { %p2966_p0 = pnand %p2965_p9, %p2959_p7 }
  0x5f   : > { %2969 = shalt.err (!%p2966_p0)
}
  0x60   : > { %2732 = dma.hbm_to_vmem [thread:$0]  (!%p3247_p2), %s3254_s19, 1024, %s353_s18, %s340_s22, %s3663_s14, %s3663_s14, %s3662_s6  }
  0x61   : > { %364 = sbr.rel (%p3173_p8) target bundleno = 1493 (0x5d5), region = 52  ;;  %s3279_s2 = sand.u32 (!%p3173_p8), 1, %s3046_s28  }
  0x62   : > { %s3282_s9 = sshll.u32 (!%p3173_p8), %s3279_s2, 6  ;;  %s367_s24 = scalar_lea.sflag (!%p3173_p8), [#allocation3], %s3279_s2 }
  0x63   : > { %s3286_s25 = scalar_lea.vmem (!%p3173_p8), [#allocation2], %s3282_s9 }
  0x66   : > { %3021 = dma.done.wait (%p3163_p4), %s367_s24, 1024  }
  0x67   : > { %3023 = vsyncadd (%p3163_p4), %s367_s24, 4294966272  ;;  %s375_s4 = sand.u32 1, %s3154_s11   ;;  %s3294_s18 = scalar_lea.vmem [#allocation5], %s3282_s9 }
  0x68   : > { %s376_s15 = scalar_lea.sflag [#allocation6], %s375_s4 }
  0x69   : > { %3025 = dma.done.wait (%p3163_p4), %s376_s15, 1024  }
  0x6a   : > { %3027 = vsyncadd (%p3163_p4), %s376_s15, 4294966272  ;;  %p3664_p8 = scmp.eq.s32.totalorder %s3154_s11, 0 }
  0x6c   : > { %3029 = dma.done.wait (%p3664_p8), [#allocation6], 512   ;;  %p3665_p2 = pmov %p3664_p8 }
  0x6e   : > { %3031 = vsyncadd (%p3665_p2), [#allocation6], 4294966784  ;;  %p3666_p11 = pmov %p3665_p2 }
  0x6f   : > { %p3667_p3 = pmov %p3665_p2 }
  0x70   : > { %3033 = dma.done.wait (%p3666_p11), [#allocation9], 1024  }
  0x71   : > { %3035 = vsyncadd (%p3667_p3), [#allocation9], 4294966272  ;;  %vm459_vm0 = vcmask 261120   ;;  %v451_v0 = vld [vmem:[#allocation7 + $0x18] sm:$0xff]  ;;  %v450_v1 = vld [vmem:[#allocation7 + $0x10] sm:$0xff]  ;;  %v3071_v24 = vmov 0.0  }
  0x72   : > { %2690 = vmatprep.subr.mxu1 %v451_v0  ;;  %v3309_v2 = vld [vmem:[%s3286_s25 + $0x10] sm:$0xff]  ;;  %2550 = vmatprep.subr.mxu0 %v451_v0  ;;  %v449_v3 = vld [vmem:[#allocation7 + $0x8] sm:$0xff]  ;;  %v448_v4 = vld [vmem:[#allocation7] sm:$0xff]  ;;  %vm3072_vm1 = vmmov 0   ;;  %vm1337_vm2 = vcmask 64512   ;;  %s3073_s6 = smov 96  }
  0x73   : > { %2694 = vmatpush3.msra.mxu1 %v451_v0  ;;  %2561 = vmatprep.mubr.msk.f32.mxu1 %vm459_vm0, %v3309_v2  ;;  %v3314_v5 = vld [vmem:[%s3286_s25 + $0x18] sm:$0xff]  ;;  %v3317_v7 = vld [vmem:[%s3286_s25 + $0x20] sm:$0xff]  ;;  %v591_v8 = vld [vmem:[#allocation8 + $0x10] sm:$0xff]  ;;  %s3074_s14 = smov 32   ;;  %s428_s21 = scalar_lea.vmem [#allocation11], %s3282_s9 }
  0x74   : > { %2691 = vmatprep.subr.mxu1 %v450_v1  ;;  %2551 = vmatpush3.msra.mxu0 %v451_v0  ;;  %v592_v6 = vld [vmem:[#allocation8 + $0x18] sm:$0xff]  ;;  %v3322_v9 = vld [vmem:[%s3286_s25] sm:$0xff]  ;;  %v3327_v10 = vld [vmem:[%s3286_s25 + $0x28] sm:$0xff]  ;;  %s2481_s0 = sshll.u32 %s3054_s30, 10  ;;  %s2262_s20 = sshll.u32 %s428_s21, 4  ;;  %s3577_s20 = int_to_ptr.vmem [resolvable:$true] %s2262_s20 }
  0x75   : > { %2695 = vmatpush3.msra.mxu1 %v450_v1  ;;  %2552 = vmatprep.subr.mxu0 %v450_v1  ;;  %v590_v11 = vld [vmem:[#allocation8 + $0x8] sm:$0xff]  ;;  %v3330_v12 = vld [vmem:[%s3286_s25 + $0x30] sm:$0xff]  ;;  %v589_v13 = vld [vmem:[#allocation8] sm:$0xff]  ;;  %s3575_s24 = scalar_lea.hbm %s3636_s8, %s2481_s0  ;;  %s2247_s30 = scalar_lea.sflag [#allocation4], %s3279_s2 }
  0x76   : > { %2692 = vmatprep.subr.mxu1 %v449_v3  ;;  %2553 = vmatpush3.msra.mxu0 %v450_v1  ;;  %v3335_v14 = vld [vmem:[%s3286_s25 + $0x8] sm:$0xff]  ;;  %v3342_v15 = vld [vmem:[%s3286_s25 + $0x38] sm:$0xff]  ;;  %v440_v16 = vld [vmem:[%s3294_s18] sm:$0xff]  ;;  %s2970_s25 = scalar_lea.vmem %s3577_s20, 1024  ;;  %s3075_s4 = smov [#allocation11]  }
  0x77   : > { %2696 = vmatpush3.msra.mxu1 %v449_v3  ;;  %2554 = vmatprep.subr.mxu0 %v449_v3  ;;  %v441_v17 = vld [vmem:[%s3294_s18 + $0x8] sm:$0xff]  ;;  %v442_v18 = vld [vmem:[%s3294_s18 + $0x10] sm:$0xff]  ;;  %v443_v19 = vld [vmem:[%s3294_s18 + $0x18] sm:$0xff]  ;;  %p2971_p4 = scmp.ne.s32.totalorder %s3577_s20, %s2970_s25  ;;  %s2974_s15 = sshll.u32 %s3075_s4, 4  ;;  %s2975_s15 = int_to_ptr.vmem [resolvable:$false] %s2974_s15 }
  0x78   : > { %2693 = vmatprep.subr.mxu1 %v448_v4  ;;  %2555 = vmatpush3.msra.mxu0 %v449_v3  ;;  %v444_v20 = vld [vmem:[%s3294_s18 + $0x20] sm:$0xff]  ;;  %v445_v21 = vld [vmem:[%s3294_s18 + $0x28] sm:$0xff]  ;;  %v446_v22 = vld [vmem:[%s3294_s18 + $0x30] sm:$0xff]  ;;  %p2977_p7 = scmp.lt.s32.totalorder %s3577_s20, %s2975_s15 }
  0x79   : > { %2697 = vmatpush3.msra.mxu1 %v448_v4  ;;  %2556 = vmatprep.subr.mxu0 %v448_v4  ;;  %v447_v23 = vld [vmem:[%s3294_s18 + $0x38] sm:$0xff]  ;;  %v2432_v31 = vld [vmem:[%s3633_s5] ss:$0 sm:$0xff]  ;;  %p2972_p5 = pnand %p2971_p4, %p3228_p13  ;;  %s2976_s18 = scalar_lea.vmem %s2975_s15, 2048 }
  0x7a   : > { %2562 = vmatmul.mubr.msk.f32.vlgmr.msra.gmra.mxu1 %vm459_vm0, %v3314_v5  ;;  %2570 = vmatprep.subr.mxu1 %v592_v6  ;;  %v2423_v34 = vld [vmem:[%s3631_s3] ss:$0 sm:$0xff]  ;;  %p2978_p1 = scmp.lt.s32.totalorder %s2976_s18, %s2970_s25 }
  0x7b   : > { %2564 = vmatprep.mubr.msk.f32.mxu1 %vm459_vm0, %v3317_v7  ;;  %2571 = vmatpush3.msra.mxu1 %v592_v6  ;;  %p2973_p10 = pneg %p2972_p5 }
  0x7c   : > { %2572 = vmatprep.subr.mxu1 %v591_v8  ;;  %2557 = vmatpush3.msra.mxu0 %v448_v4  ;;  %p2979_p12 = por %p2978_p1, %p2977_p7 }
  0x7d   : > { %2573 = vmatpush3.msra.mxu1 %v591_v8  ;;  %2558 = vmatprep.mubr.msk.f32.mxu0 %vm459_vm0, %v3322_v9 }
  0x7e   : > { %2565 = vmatmul.mubr.msk.f32.gmra.mxu1 %vm459_vm0, %v3327_v10  ;;  %2574 = vmatprep.subr.mxu1 %v590_v11  ;;  %p2980_p9 = pnand %p2979_p12, %p2973_p10 }
  0x7f   : > { %2567 = vmatprep.mubr.msk.f32.mxu1 %vm459_vm0, %v3330_v12  ;;  %2575 = vmatpush3.msra.mxu1 %v590_v11 }
  0x80   : > { %2576 = vmatprep.subr.mxu1 %v589_v13  ;;  %2559 = vmatmul.mubr.msk.f32.vlgmr.msra.gmra.mxu0 %vm459_vm0, %v3335_v14 }
  0x81   : > { %2577 = vmatpush3.msra.mxu1 %v589_v13  ;;  %2590 = vmatprep.subr.mxu0 %v3071_v24 }
  0x82   : > { %2568 = vmatmul.mubr.msk.f32.gmra.mxu1 %vm459_vm0, %v3342_v15  ;;  %2595 = vmatprep.subr.mxu1 %v3071_v24 }
  0x83   : > { %2578 = vmatprep.mubr.msk.f32.mxu1 %vm459_vm0, %v440_v16  ;;  %2592 = vmatprep.mubr.msk.f32.mxu0 %vm3072_vm1, %v3071_v24 }
  0x86   : > { %2579 = vmatmul.mubr.msk.f32.vlgmr.msra.gmra.mxu1 %vm459_vm0, %v441_v17 }
  0x87   : > { %2581 = vmatprep.mubr.msk.f32.mxu1 %vm459_vm0, %v442_v18 }
  0x8a   : > { %2582 = vmatmul.mubr.msk.f32.gmra.mxu1 %vm459_vm0, %v443_v19 }
  0x8b   : > { %2584 = vmatprep.mubr.msk.f32.mxu1 %vm459_vm0, %v444_v20 }
  0x8e   : > { %2585 = vmatmul.mubr.msk.f32.gmra.mxu1 %vm459_vm0, %v445_v21 }
  0x8f   : > { %2587 = vmatprep.mubr.msk.f32.mxu1 %vm459_vm0, %v446_v22 }
  0x92   : > { %2588 = vmatmul.mubr.msk.f32.gmra.mxu1 %vm459_vm0, %v447_v23 }
  0x93   : > { %2597 = vmatprep.mubr.msk.f32.mxu1 %vm3072_vm1, %v3071_v24 }
 0x13a   : > { %v2563_v25 = vpop.f32.mrf.mxu1 }
 0x13b   : > { %v3400_v45 = vadd.f32 %v2563_v25, %v2423_v34 }
 0x13c   : > { %v560_v26 = vpop.f32.mrf.mxu1 }
 0x13d   : > { %v3411_v48 = vadd.f32 %v2423_v34, %v560_v26 }
 0x13e   : > { %v2566_v27 = vpop.f32.mrf.mxu1 }
 0x13f   : > { %v3422_v51 = vadd.f32 %v2566_v27, %v2423_v34 }
 0x140   : > { %v570_v28 = vpop.f32.mrf.mxu1  ;;  %v2560_v32 = vpop.f32.mrf.mxu0 }
 0x141   : > { %v3378_v37 = vadd.f32 %v2560_v32, %v2423_v34  ;;  %v3433_v54 = vadd.f32 %v2423_v34, %v570_v28 }
 0x142   : > { %v2569_v29 = vpop.f32.mrf.mxu1  ;;  %v550_v39 = vpop.f32.mrf.mxu0 }
 0x143   : > { %v3389_v42 = vadd.f32 %v2423_v34, %v550_v39  ;;  %v3444_v57 = vadd.f32 %v2569_v29, %v2423_v34 }
 0x144   : > { %v580_v30 = vpop.f32.mrf.mxu1 }
 0x145   : > { %v3453_v58 = vadd.f32 %v2423_v34, %v580_v30 }
 0x146   : > { %v2580_v33 = vpop.f32.mrf.mxu1 }
 0x147   : > { %v3376_v35 = vadd.f32 %v2580_v33, %v2432_v31 }
 0x148   : > { %v690_v36 = vpop.f32.mrf.mxu1 }
 0x149   : > { %v3380_v38 = vadd.f32 %v2432_v31, %v690_v36  ;;  %2596 = vmatpush3.xpose.msk.msra.mxu1 %vm459_vm0, %v3376_v35 }
 0x14a   : > { %v2583_v40 = vpop.f32.mrf.mxu1  ;;  %2605 = vmatprep.subr.mxu1 %v3071_v24 }
 0x14b   : > { %v3385_v41 = vadd.f32 %v2583_v40, %v2432_v31  ;;  %2591 = vmatpush3.xpose.msk.msra.mxu0 %vm459_vm0, %v3380_v38 }
 0x14c   : > { %v700_v43 = vpop.f32.mrf.mxu1  ;;  %2598 = vmatmul.mubr.msk.f32.vlgmr.msra.gmra.mxu1 %vm459_vm0, %v3378_v37  ;;  %2600 = vmatprep.subr.mxu0 %v3071_v24 }
 0x14d   : > { %v3394_v44 = vadd.f32 %v2432_v31, %v700_v43  ;;  %2606 = vmatpush3.xpose.msk.msra.mxu1 %vm459_vm0, %v3385_v41  ;;  %2607 = vmatprep.mubr.msk.f32.mxu1 %vm3072_vm1, %v3071_v24 }
 0x14e   : > { %v2586_v46 = vpop.f32.mrf.mxu1  ;;  %2593 = vmatmul.mubr.msk.f32.vlgmr.msra.gmra.mxu0 %vm459_vm0, %v3389_v42  ;;  %2615 = vmatprep.subr.mxu1 %v3071_v24 }
 0x14f   : > { %v3405_v47 = vadd.f32 %v2586_v46, %v2432_v31  ;;  %2601 = vmatpush3.xpose.msk.msra.mxu0 %vm459_vm0, %v3394_v44  ;;  %2602 = vmatprep.mubr.msk.f32.mxu0 %vm3072_vm1, %v3071_v24 }
 0x150   : > { %v710_v49 = vpop.f32.mrf.mxu1  ;;  %2608 = vmatmul.mubr.msk.f32.vlgmr.msra.gmra.mxu1 %vm459_vm0, %v3400_v45  ;;  %2610 = vmatprep.subr.mxu0 %v3071_v24 }
 0x151   : > { %v3416_v50 = vadd.f32 %v2432_v31, %v710_v49  ;;  %2616 = vmatpush3.xpose.msk.msra.mxu1 %vm459_vm0, %v3405_v47  ;;  %2617 = vmatprep.mubr.msk.f32.mxu1 %vm3072_vm1, %v3071_v24 }
 0x152   : > { %v2589_v52 = vpop.f32.mrf.mxu1  ;;  %2603 = vmatmul.mubr.msk.f32.vlgmr.msra.gmra.mxu0 %vm459_vm0, %v3411_v48  ;;  %2625 = vmatprep.subr.mxu1 %v3071_v24 }
 0x153   : > { %v3427_v53 = vadd.f32 %v2589_v52, %v2432_v31  ;;  %2611 = vmatpush3.xpose.msk.msra.mxu0 %vm459_vm0, %v3416_v50  ;;  %2612 = vmatprep.mubr.msk.f32.mxu0 %vm3072_vm1, %v3071_v24 }
 0x154   : > { %v720_v55 = vpop.f32.mrf.mxu1  ;;  %2618 = vmatmul.mubr.msk.f32.vlgmr.msra.gmra.mxu1 %vm459_vm0, %v3422_v51  ;;  %2620 = vmatprep.subr.mxu0 %v3071_v24 }
 0x155   : > { %v3438_v56 = vadd.f32 %v2432_v31, %v720_v55  ;;  %2626 = vmatpush3.xpose.msk.msra.mxu1 %vm459_vm0, %v3427_v53  ;;  %2627 = vmatprep.mubr.msk.f32.mxu1 %vm3072_vm1, %v3071_v24 }
 0x156   : > { %2613 = vmatmul.mubr.msk.f32.vlgmr.msra.gmra.mxu0 %vm459_vm0, %v3433_v54  ;;  %2635 = vmatprep.subr.mxu1 %v3071_v24 }
 0x157   : > { %2621 = vmatpush3.xpose.msk.msra.mxu0 %vm459_vm0, %v3438_v56  ;;  %2622 = vmatprep.mubr.msk.f32.mxu0 %vm3072_vm1, %v3071_v24 }
 0x158   : > { %2628 = vmatmul.mubr.msk.f32.vlgmr.msra.gmra.mxu1 %vm459_vm0, %v3444_v57  ;;  %2630 = vmatprep.subr.mxu0 %v3071_v24 }
 0x159   : > { %2637 = vmatprep.mubr.msk.f32.mxu1 %vm3072_vm1, %v3071_v24 }
 0x15a   : > { %2623 = vmatmul.mubr.msk.f32.vlgmr.msra.gmra.mxu0 %vm459_vm0, %v3453_v58 }
 0x15b   : > { %2632 = vmatprep.mubr.msk.f32.mxu0 %vm3072_vm1, %v3071_v24 }
 0x20c   : > { %v877_v59 = vpop.f32.mrf.mxu1 }
 0x20d   : > { %v1341_v4 = vsel %vm1337_vm2, %v877_v59, -inf }
 0x20e   : > { %v801_v60 = vpop.f32.mrf.mxu0  ;;  %v2599_v61 = vpop.f32.mrf.mxu1 }
 0x20f   : > { %v1338_v62 = vsel %vm1337_vm2, %v801_v60, -inf }
 0x210   : > { %v1029_v63 = vpop.f32.mrf.mxu1  ;;  %1339 = vmax.xlane.f32.xlu0 %v1338_v62  ;;  %v2594_v0 = vpop.f32.mrf.mxu0 }
 0x211   : > { %v1347_v17 = vsel %vm1337_vm2, %v1029_v63, -inf }
 0x212   : > { %v953_v1 = vpop.f32.mrf.mxu0  ;;  %v2609_v3 = vpop.f32.mrf.mxu1 }
 0x213   : > { %v1344_v6 = vsel %vm1337_vm2, %v953_v1, -inf }
 0x214   : > { %v1181_v8 = vpop.f32.mrf.mxu1  ;;  %1342 = vmax.xlane.f32.xlu0 %v1341_v4  ;;  %1345 = vmax.xlane.f32.xlu1 %v1344_v6  ;;  %v2604_v11 = vpop.f32.mrf.mxu0 }
 0x215   : > { %v1353_v23 = vsel %vm1337_vm2, %v1181_v8, -inf }
 0x216   : > { %v1105_v13 = vpop.f32.mrf.mxu0  ;;  %v2619_v16 = vpop.f32.mrf.mxu1 }
 0x217   : > { %v1350_v18 = vsel %vm1337_vm2, %v1105_v13, -inf }
 0x218   : > { %v1333_v19 = vpop.f32.mrf.mxu1  ;;  %1348 = vmax.xlane.f32.xlu1 %v1347_v17  ;;  %1351 = vmax.xlane.f32.xlu0 %v1350_v18  ;;  %v2614_v20 = vpop.f32.mrf.mxu0 }
 0x219   : > { %v1359_v27 = vsel %vm1337_vm2, %v1333_v19, -inf }
 0x21a   : > { %v1257_v21 = vpop.f32.mrf.mxu0  ;;  %v2629_v22 = vpop.f32.mrf.mxu1 }
 0x21b   : > { %v1356_v25 = vsel %vm1337_vm2, %v1257_v21, -inf }
 0x21c   : > { %1354 = vmax.xlane.f32.xlu1 %v1353_v23  ;;  %1357 = vmax.xlane.f32.xlu0 %v1356_v25  ;;  %v2624_v26 = vpop.f32.mrf.mxu0 }
 0x220   : > { %1360 = vmax.xlane.f32.xlu1 %v1359_v27 }
 0x231   : > { %1502 = vrot.lane.b32.xlu1 %v3376_v35, %s3073_s6 }
 0x232   : > { %1426 = vrot.lane.b32.xlu0 %v3380_v38, %s3073_s6 }
 0x235   : > { %1578 = vrot.lane.b32.xlu1 %v3394_v44, %s3073_s6 }
 0x236   : > { %1730 = vrot.lane.b32.xlu0 %v3416_v50, %s3073_s6 }
 0x239   : > { %1654 = vrot.lane.b32.xlu1 %v3385_v41, %s3073_s6 }
 0x23d   : > { %1806 = vrot.lane.b32.xlu1 %v3405_v47, %s3073_s6 }
 0x299   : > { %v1340_v28 = vpop.xlane.xlu0 %1339 }
 0x29a   : > { %v1362_v29 = vsub.f32 %v801_v60, %v1340_v28 }
 0x29c   : > { %v1370_v30 = vmul.f32 1.442695, %v1362_v29 }
 0x29d   : > { %v1343_v31 = vpop.xlane.xlu0 %1342  ;;  %v1346_v32 = vpop.xlane.xlu1 %1345 }
 0x29e   : > { %2804 = vpow2.f32 %v1370_v30  ;;  %v1363_v33 = vsub.f32 %v877_v59, %v1343_v31  ;;  %v1364_v34 = vsub.f32 %v953_v1, %v1346_v32 }
 0x2a0   : > { %v1372_v35 = vmul.f32 1.442695, %v1363_v33  ;;  %v1374_v36 = vmul.f32 1.442695, %v1364_v34 }
 0x2a1   : > { %v1349_v38 = vpop.xlane.xlu1 %1348  ;;  %v1352_v39 = vpop.xlane.xlu0 %1351 }
 0x2a2   : > { %2806 = vpow2.f32 %v1372_v35  ;;  %v1365_v40 = vsub.f32 %v1029_v63, %v1349_v38  ;;  %v1366_v43 = vsub.f32 %v1105_v13, %v1352_v39 }
 0x2a3   : > { %2808 = vpow2.f32 %v1374_v36 }
 0x2a4   : > { %v1376_v41 = vmul.f32 1.442695, %v1365_v40  ;;  %v1378_v44 = vmul.f32 1.442695, %v1366_v43 }
 0x2a5   : > { %v1355_v46 = vpop.xlane.xlu1 %1354  ;;  %v1358_v47 = vpop.xlane.xlu0 %1357 }
 0x2a6   : > { %2810 = vpow2.f32 %v1376_v41  ;;  %v1367_v49 = vsub.f32 %v1181_v8, %v1355_v46  ;;  %v1368_v50 = vsub.f32 %v1257_v21, %v1358_v47 }
 0x2a7   : > { %2812 = vpow2.f32 %v1378_v44 }
 0x2a8   : > { %v1380_v52 = vmul.f32 1.442695, %v1367_v49  ;;  %v1382_v55 = vmul.f32 1.442695, %v1368_v50 }
 0x2a9   : > { %v1361_v59 = vpop.xlane.xlu1 %1360  ;;  %v1427_v60 = vpop.permute.xlu0 %1426 }
 0x2aa   : > { %2814 = vpow2.f32 %v1380_v52  ;;  %v1369_v61 = vsub.f32 %v1333_v19, %v1361_v59  ;;  %2631 = vmatpush3.msra.mxu0 %v1427_v60 }
 0x2ab   : > { %v2805_v62 = vpop.eup %2804  ;;  %2816 = vpow2.f32 %v1382_v55  ;;  %2640 = vmatprep.subr.mxu0 %v3071_v24 }
 0x2ac   : > { %v1384_v63 = vmul.f32 1.442695, %v1369_v61  ;;  %v1386_v0 = vsel %vm1337_vm2, %v2805_v62, 0.0 }
 0x2ad   : > { %v1503_v1 = vpop.permute.xlu1 %1502  ;;  %1387 = vadd.xlane.f32.xlu0 %v1386_v0  ;;  %v1731_v27 = vpop.permute.xlu0 %1730 }
 0x2ae   : > { %2818 = vpow2.f32 %v1384_v63  ;;  %2636 = vmatpush3.msra.mxu1 %v1503_v1 }
 0x2af   : > { %v2807_v3 = vpop.eup %2806  ;;  %2645 = vmatprep.subr.mxu1 %v3071_v24 }
 0x2b0   : > { %v2809_v4 = vpop.eup %2808  ;;  %v1389_v6 = vsel %vm1337_vm2, %v2807_v3, 0.0 }
 0x2b1   : > { %1390 = vadd.xlane.f32.xlu1 %v1389_v6  ;;  %v1392_v8 = vsel %vm1337_vm2, %v2809_v4, 0.0  ;;  %v1579_v25 = vpop.permute.xlu1 %1578  ;;  %v2077_v6 = vld [vmem:[#allocation10 + $0x18] sm:$0xff] }
 0x2b2   : > { %1393 = vadd.xlane.f32.xlu0 %v1392_v8  ;;  %v2076_v8 = vld [vmem:[#allocation10 + $0x10] sm:$0xff] }
 0x2b3   : > { %v2811_v11 = vpop.eup %2810 }
 0x2b4   : > { %v2813_v13 = vpop.eup %2812  ;;  %v1395_v16 = vsel %vm1337_vm2, %v2811_v11, 0.0 }
 0x2b5   : > { %1396 = vadd.xlane.f32.xlu1 %v1395_v16  ;;  %v1398_v17 = vsel %vm1337_vm2, %v2813_v13, 0.0  ;;  %v1655_v26 = vpop.permute.xlu1 %1654 }
 0x2b6   : > { %1399 = vadd.xlane.f32.xlu0 %v1398_v17 }
 0x2b7   : > { %v2815_v18 = vpop.eup %2814 }
 0x2b8   : > { %v3491_v19 = vpop.eup %2816  ;;  %v1401_v20 = vsel %vm1337_vm2, %v2815_v18, 0.0 }
 0x2b9   : > { %1402 = vadd.xlane.f32.xlu1 %v1401_v20  ;;  %v1404_v21 = vsel %vm1337_vm2, %v3491_v19, 0.0  ;;  %v1807_v28 = vpop.permute.xlu1 %1806 }
 0x2ba   : > { %1405 = vadd.xlane.f32.xlu0 %v1404_v21 }
 0x2bb   : > { %v3496_v22 = vpop.eup %2818 }
 0x2bc   : > { %v1407_v23 = vsel %vm1337_vm2, %v3496_v22, 0.0 }
 0x2bd   : > { %1408 = vadd.xlane.f32.xlu1 %v1407_v23 }
 0x2ce   : > { %1958 = vrot.lane.b32.xlu1 %v3427_v53, %s3073_s6 }
 0x2d0   : > { %1882 = vrot.lane.b32.xlu0 %v3438_v56, %s3073_s6 }
 0x336   : > { %v1388_v29 = vpop.xlane.xlu0 %1387 }
 0x337   : > { %2820 = vrcp.f32 %v1388_v29 }
 0x33a   : > { %v1391_v30 = vpop.xlane.xlu1 %1390 }
 0x33b   : > { %2822 = vrcp.f32 %v1391_v30  ;;  %v1394_v31 = vpop.xlane.xlu0 %1393 }
 0x33c   : > { %2824 = vrcp.f32 %v1394_v31 }
 0x33e   : > { %v1397_v32 = vpop.xlane.xlu1 %1396 }
 0x33f   : > { %2826 = vrcp.f32 %v1397_v32  ;;  %v1400_v33 = vpop.xlane.xlu0 %1399 }
 0x340   : > { %2828 = vrcp.f32 %v1400_v33 }
 0x342   : > { %v1403_v34 = vpop.xlane.xlu1 %1402 }
 0x343   : > { %2830 = vrcp.f32 %v1403_v34  ;;  %v1406_v53 = vpop.xlane.xlu0 %1405 }
 0x344   : > { %v2821_v35 = vpop.eup %2820  ;;  %2832 = vrcp.f32 %v1406_v53 }
 0x345   : > { %v1418_v56 = vmul.f32 %v2821_v35, %v2805_v62 }
 0x346   : > { %v1409_v36 = vpop.xlane.xlu1 %1408 }
 0x347   : > { %2834 = vrcp.f32 %v1409_v36  ;;  %2633 = vmatmul.mubr.msk.f32.vlgmr.msra.gmra.mxu0 %vm1337_vm2, %v1418_v56  ;;  %v1883_v50 = vpop.permute.xlu0 %1882 }
 0x348   : > { %v2823_v38 = vpop.eup %2822  ;;  %2641 = vmatpush3.msra.mxu0 %v1579_v25  ;;  %2642 = vmatprep.mubr.msk.f32.mxu0 %vm3072_vm1, %v3071_v24  ;;  %v2075_v25 = vld [vmem:[#allocation10 + $0x8] sm:$0xff] }
 0x349   : > { %v2825_v39 = vpop.eup %2824  ;;  %2650 = vmatprep.subr.mxu0 %v3071_v24  ;;  %v1419_v40 = vmul.f32 %v2823_v38, %v2807_v3 }
 0x34a   : > { %v1420_v43 = vmul.f32 %v2825_v39, %v2809_v4  ;;  %v1959_v60 = vpop.permute.xlu1 %1958 }
 0x34b   : > { %2638 = vmatmul.mubr.msk.f32.vlgmr.msra.gmra.mxu1 %vm1337_vm2, %v1419_v40 }
 0x34c   : > { %v2827_v41 = vpop.eup %2826  ;;  %2643 = vmatmul.mubr.msk.f32.vlgmr.msra.gmra.mxu0 %vm1337_vm2, %v1420_v43  ;;  %2646 = vmatpush3.msra.mxu1 %v1655_v26  ;;  %v2074_v26 = vld [vmem:[#allocation10] sm:$0xff] }
 0x34d   : > { %v2829_v44 = vpop.eup %2828  ;;  %2651 = vmatpush3.msra.mxu0 %v1731_v27  ;;  %2647 = vmatprep.mubr.msk.f32.mxu1 %vm3072_vm1, %v3071_v24  ;;  %v1421_v46 = vmul.f32 %v2827_v41, %v2811_v11  ;;  %v2465_v41 = vld [vmem:[%s3635_s7] ss:$0 sm:$0xff] }
 0x34e   : > { %2652 = vmatprep.mubr.msk.f32.mxu0 %vm3072_vm1, %v3071_v24  ;;  %2655 = vmatprep.subr.mxu1 %v3071_v24  ;;  %v1422_v47 = vmul.f32 %v2829_v44, %v2813_v13 }
 0x34f   : > { %2660 = vmatprep.subr.mxu0 %v3071_v24  ;;  %2648 = vmatmul.mubr.msk.f32.vlgmr.msra.gmra.mxu1 %vm1337_vm2, %v1421_v46 }
 0x350   : > { %v2831_v49 = vpop.eup %2830  ;;  %2653 = vmatmul.mubr.msk.f32.vlgmr.msra.gmra.mxu0 %vm1337_vm2, %v1422_v47  ;;  %2656 = vmatpush3.msra.mxu1 %v1807_v28 }
 0x351   : > { %v2833_v52 = vpop.eup %2832  ;;  %2661 = vmatpush3.msra.mxu0 %v1883_v50  ;;  %2657 = vmatprep.mubr.msk.f32.mxu1 %vm3072_vm1, %v3071_v24  ;;  %v1423_v55 = vmul.f32 %v2831_v49, %v2815_v18 }
 0x352   : > { %2662 = vmatprep.mubr.msk.f32.mxu0 %vm3072_vm1, %v3071_v24  ;;  %2665 = vmatprep.subr.mxu1 %v3071_v24  ;;  %v1424_v59 = vmul.f32 %v2833_v52, %v3491_v19 }
 0x353   : > { %2658 = vmatmul.mubr.msk.f32.vlgmr.msra.gmra.mxu1 %vm1337_vm2, %v1423_v55  ;;  %2670 = vmatprep.subr.mxu0 %v2077_v6 }
 0x354   : > { %v2835_v61 = vpop.eup %2834  ;;  %2663 = vmatmul.mubr.msk.f32.vlgmr.msra.gmra.mxu0 %vm1337_vm2, %v1424_v59  ;;  %2666 = vmatpush3.msra.mxu1 %v1959_v60 }
 0x355   : > { %2667 = vmatprep.mubr.msk.f32.mxu1 %vm3072_vm1, %v3071_v24  ;;  %v1425_v62 = vmul.f32 %v2835_v61, %v3496_v22  ;;  %2671 = vmatpush3.msra.mxu0 %v2077_v6 }
 0x356   : > { %2672 = vmatprep.subr.mxu0 %v2076_v8 }
 0x357   : > { %2668 = vmatmul.mubr.msk.f32.vlgmr.msra.gmra.mxu1 %vm1337_vm2, %v1425_v62  ;;  %2673 = vmatpush3.msra.mxu0 %v2076_v8 }
 0x358   : > { %2674 = vmatprep.subr.mxu0 %v2075_v25 }
 0x359   : > { %2675 = vmatpush3.msra.mxu0 %v2075_v25 }
 0x35a   : > { %2676 = vmatprep.subr.mxu0 %v2074_v26 }
 0x35b   : > { %2677 = vmatpush3.msra.mxu0 %v2074_v26 }
 0x407   : > { %v1498_v63 = vpop.f32.mrf.mxu0 }
 0x408   : > { %2042 = vrot.lane.b32.xlu0 %v1498_v63, %s3074_s14 }
 0x409   : > { %v2634_v0 = vpop.f32.mrf.mxu0 }
 0x40b   : > { %v1574_v1 = vpop.f32.mrf.mxu1 }
 0x40c   : > { %v1650_v3 = vpop.f32.mrf.mxu0  ;;  %2044 = vrot.lane.b32.xlu1 %v1574_v1, %s3074_s14 }
 0x40d   : > { %2046 = vrot.lane.b32.xlu0 %v1650_v3, %s3074_s14  ;;  %v2639_v4 = vpop.f32.mrf.mxu1 }
 0x40e   : > { %v2644_v11 = vpop.f32.mrf.mxu0 }
 0x40f   : > { %v1726_v13 = vpop.f32.mrf.mxu1 }
 0x410   : > { %v1802_v24 = vpop.f32.mrf.mxu0  ;;  %2048 = vrot.lane.b32.xlu1 %v1726_v13, %s3074_s14 }
 0x411   : > { %2050 = vrot.lane.b32.xlu0 %v1802_v24, %s3074_s14  ;;  %v2649_v16 = vpop.f32.mrf.mxu1 }
 0x412   : > { %v2654_v17 = vpop.f32.mrf.mxu0 }
 0x413   : > { %v1878_v18 = vpop.f32.mrf.mxu1 }
 0x414   : > { %v1954_v19 = vpop.f32.mrf.mxu0  ;;  %2052 = vrot.lane.b32.xlu1 %v1878_v18, %s3074_s14 }
 0x415   : > { %2054 = vrot.lane.b32.xlu0 %v1954_v19, %s3074_s14  ;;  %v2659_v20 = vpop.f32.mrf.mxu1 }
 0x416   : > { %v2664_v21 = vpop.f32.mrf.mxu0 }
 0x417   : > { %v2030_v22 = vpop.f32.mrf.mxu1 }
 0x418   : > { %2056 = vrot.lane.b32.xlu1 %v2030_v22, %s3074_s14 }
 0x419   : > { %v2669_v23 = vpop.f32.mrf.mxu1 }
 0x47a   : > { %v2043_v27 = vpop.permute.xlu0 %2042 }
 0x47b   : > { %v2066_v28 = vmul.f32 %v2043_v27, %v3389_v42 }
 0x47d   : > { %2093 = vrot.lane.b32.xlu0 %v2066_v28, %s3073_s6 }
 0x47e   : > { %v2045_v29 = vpop.permute.xlu1 %2044 }
 0x47f   : > { %v2067_v30 = vmul.f32 %v2045_v29, %v3378_v37  ;;  %v2047_v31 = vpop.permute.xlu0 %2046 }
 0x480   : > { %v2068_v32 = vmul.f32 %v2047_v31, %v3411_v48 }
 0x481   : > { %2095 = vrot.lane.b32.xlu1 %v2067_v30, %s3073_s6 }
 0x482   : > { %2097 = vrot.lane.b32.xlu0 %v2068_v32, %s3073_s6  ;;  %v2049_v33 = vpop.permute.xlu1 %2048 }
 0x483   : > { %v2069_v34 = vmul.f32 %v2049_v33, %v3400_v45  ;;  %v2051_v53 = vpop.permute.xlu0 %2050 }
 0x484   : > { %v2070_v35 = vmul.f32 %v2051_v53, %v3433_v54 }
 0x485   : > { %2099 = vrot.lane.b32.xlu1 %v2069_v34, %s3073_s6 }
 0x486   : > { %2101 = vrot.lane.b32.xlu0 %v2070_v35, %s3073_s6  ;;  %v2053_v42 = vpop.permute.xlu1 %2052 }
 0x487   : > { %v2071_v37 = vmul.f32 %v2053_v42, %v3422_v51  ;;  %v2055_v56 = vpop.permute.xlu0 %2054 }
 0x488   : > { %v2072_v48 = vmul.f32 %v2055_v56, %v3453_v58 }
 0x489   : > { %2103 = vrot.lane.b32.xlu1 %v2071_v37, %s3073_s6 }
 0x48a   : > { %2105 = vrot.lane.b32.xlu0 %v2072_v48, %s3073_s6  ;;  %v2057_v36 = vpop.permute.xlu1 %2056 }
 0x48b   : > { %v2073_v45 = vmul.f32 %v2057_v36, %v3444_v57 }
 0x48d   : > { %2107 = vrot.lane.b32.xlu1 %v2073_v45, %s3073_s6 }
 0x4ef   : > { %v2094_v54 = vpop.permute.xlu0 %2093 }
 0x4f0   : > { %2678 = vmatprep.mubr.msk.f32.mxu0 %vm459_vm0, %v2094_v54 }
 0x4f3   : > { %v2096_v38 = vpop.permute.xlu1 %2095 }
 0x4f4   : > { %v2098_v39 = vpop.permute.xlu0 %2097  ;;  %2679 = vmatmul.mubr.msk.f32.vlgmr.msra.gmra.mxu0 %vm459_vm0, %v2096_v38 }
 0x4f5   : > { %2681 = vmatprep.mubr.msk.f32.mxu0 %vm459_vm0, %v2098_v39 }
 0x4f7   : > { %v2100_v51 = vpop.permute.xlu1 %2099 }
 0x4f8   : > { %v2102_v58 = vpop.permute.xlu0 %2101  ;;  %2682 = vmatmul.mubr.msk.f32.gmra.mxu0 %vm459_vm0, %v2100_v51 }
 0x4f9   : > { %2684 = vmatprep.mubr.msk.f32.mxu0 %vm459_vm0, %v2102_v58 }
 0x4fb   : > { %v2104_v40 = vpop.permute.xlu1 %2103 }
 0x4fc   : > { %v2106_v57 = vpop.permute.xlu0 %2105  ;;  %2685 = vmatmul.mubr.msk.f32.gmra.mxu0 %vm459_vm0, %v2104_v40 }
 0x4fd   : > { %2687 = vmatprep.mubr.msk.f32.mxu0 %vm459_vm0, %v2106_v57 }
 0x4ff   : > { %v2108_v43 = vpop.permute.xlu1 %2107 }
 0x500   : > { %2688 = vmatmul.mubr.msk.f32.gmra.mxu0 %vm459_vm0, %v2108_v43 }
 0x5b4   : > { %v2680_v44 = vpop.f32.mrf.mxu0 }
 0x5b5   : > { %v2197_v46 = vadd.f32 %v2680_v44, %v2465_v41 }
 0x5b6   : > { %v2191_v47 = vpop.f32.mrf.mxu0 }
 0x5b7   : > { %v2231_v49 = vadd.f32 %v2197_v46, %v3335_v14  ;;  %v2192_v50 = vadd.f32 %v2465_v41, %v2191_v47 }
 0x5b8   : > { %v2683_v52 = vpop.f32.mrf.mxu0 }
 0x5b9   : > { %2239 = vst.msk [vmem:[%s428_s21 + $0x8] sm:$0xff] %vm459_vm0, %v2231_v49  ;;  %v2230_v55 = vadd.f32 %v2192_v50, %v3322_v9  ;;  %v2207_v59 = vadd.f32 %v2683_v52, %v2465_v41 }
 0x5ba   : > { %v2201_v60 = vpop.f32.mrf.mxu0 }
 0x5bb   : > { %2238 = vst.msk [vmem:[%s428_s21] sm:$0xff] %vm459_vm0, %v2230_v55  ;;  %v2233_v61 = vadd.f32 %v2207_v59, %v3314_v5  ;;  %v2202_v62 = vadd.f32 %v2465_v41, %v2201_v60 }
 0x5bc   : > { %v2686_v63 = vpop.f32.mrf.mxu0 }
 0x5bd   : > { %2241 = vst.msk [vmem:[%s428_s21 + $0x18] sm:$0xff] %vm459_vm0, %v2233_v61  ;;  %v2232_v14 = vadd.f32 %v2202_v62, %v3309_v2  ;;  %v2217_v0 = vadd.f32 %v2686_v63, %v2465_v41 }
 0x5be   : > { %v2211_v1 = vpop.f32.mrf.mxu0 }
 0x5bf   : > { %2240 = vst.msk [vmem:[%s428_s21 + $0x10] sm:$0xff] %vm459_vm0, %v2232_v14  ;;  %v2235_v3 = vadd.f32 %v2217_v0, %v3327_v10  ;;  %v2212_v9 = vadd.f32 %v2465_v41, %v2211_v1 }
 0x5c0   : > { %v2689_v4 = vpop.f32.mrf.mxu0 }
 0x5c1   : > { %2243 = vst.msk [vmem:[%s428_s21 + $0x28] sm:$0xff] %vm459_vm0, %v2235_v3  ;;  %v2234_v6 = vadd.f32 %v2212_v9, %v3317_v7  ;;  %v2227_v5 = vadd.f32 %v2689_v4, %v2465_v41 }
 0x5c2   : > { %v2221_v8 = vpop.f32.mrf.mxu0 }
 0x5c3   : > { %2242 = vst.msk [vmem:[%s428_s21 + $0x20] sm:$0xff] %vm459_vm0, %v2234_v6  ;;  %v2237_v2 = vadd.f32 %v2227_v5, %v3342_v15  ;;  %v2222_v11 = vadd.f32 %v2465_v41, %v2221_v8 }
 0x5c5   : > { %2245 = vst.msk [vmem:[%s428_s21 + $0x38] sm:$0xff] %vm459_vm0, %v2237_v2  ;;  %v2236_v7 = vadd.f32 %v2222_v11, %v3330_v12 }
 0x5c7   : > { %2244 = vst.msk [vmem:[%s428_s21 + $0x30] sm:$0xff] %vm459_vm0, %v2236_v7 }
 0x5c8   : > { %2983 = shalt.err (!%p2980_p9)
}
 0x5c9   : > { %s2984_s11 = scalar_lea.hbm %s3575_s24, 1024  ;;  %s2988_s26 = scalar_lea.hbm %s3636_s8, 2048 }
 0x5ca   : > { %p2985_p0 = scmp.ne.s32.totalorder %s3575_s24, %s2984_s11  ;;  %p2989_p11 = scmp.lt.s32.totalorder %s3575_s24, %s3636_s8 }
 0x5cb   : > { %p2990_p3 = scmp.lt.s32.totalorder %s2988_s26, %s2984_s11 }
 0x5cc   : > { %p2986_p8 = pnand %p2985_p0, %p3228_p13 }
 0x5cd   : > { %p2991_p4 = por %p2990_p3, %p2989_p11 }
 0x5ce   : > { %p2987_p2 = pneg %p2986_p8 }
 0x5d0   : > { %p2992_p5 = pnand %p2991_p4, %p2987_p2 }
 0x5d2   : > { %2995 = shalt.err (!%p2992_p5)
}
 0x5d3   : > { %s3076_s16 = smov 128   ;;  %s3077_s22 = smov 8  }
 0x5d4   : > { %2714 = dma.vmem_to_hbm [thread:$0]  (%p3228_p13), %s3577_s20, 1024, %s3575_s24, %s2247_s30, %s3076_s16, %s3076_s16, %s3077_s22  }
 0x5d5 PF: > { %s2277_s0 = sand.u32 1, %s3042_s27   ;;  %p3669_p10 = scmp.ge.s32.totalorder %s3062_s10, 2 }
 0x5d6   : > { %s2278_s23 = scalar_lea.sflag [#allocation4], %s2277_s0 }
 0x5d7   : > { %p2734_p7 = pnand %p3669_p10, %p3168_p6 }
 0x5d9   : > { %p2735_p1 = pneg %p2734_p7 }
 0x5db   : > { %3037 = dma.done.wait (%p2735_p1), %s2278_s23, 1024  }
 0x5dc   : > { %3039 = vsyncadd (%p2735_p1), %s2278_s23, 4294966272  ;;  %s28_s10 = sadd.s32 1, %s3062_s10   ;;  %s3670_s30 = sld [smem:[#allocation17_spill]] }
 0x5dd   : > { %p25_p12 = scmp.ge.s32.totalorder %s28_s10, 4   ;;  %s3671_s9 = sld [smem:[#allocation19_spill]] }
 0x5de   : > { %s3672_s27 = smov %s3046_s28  ;;  %s3673_s28 = smov %s3050_s29 }
 0x5df   : > { %s3674_s29 = smov %s3240_s17  ;;  %27 = sbr.rel (!%p25_p12) target bundleno = 14 (0xe), region = 122 }
 0x5e4   :  { %2283 = vsyncpa [#allocation3], 1 }
 0x5e5   :  { %2285 = vsyncpa [#allocation3 + $0x1], 1 }
 0x5e6   :  { %2286 = vsyncpa [#allocation6], 1 }
 0x5e7   :  { %2288 = vsyncpa [#allocation6 + $0x1], 1 }
 0x5e8   :  { %2289 = vsyncpa [#allocation9], 1 }
 0x5e9   :  { %2290 = vsyncpa [#allocation4], 1 }
 0x5ea   :  { %2292 = vsyncpa [#allocation4 + $0x1], 1 }

</bundles_post_ra>
